<compile_context>
chip_gen: v7x
topology: tpu7x:2x2x1
jax: 0.10.0
libtpu: 0.0.40
codegen_flags: <defaults>
</compile_context>

<pallas_src>
import jax
import jax.numpy as jnp
from jax.experimental import pallas as pl
from jax.experimental.pallas import tpu as pltpu


_VPU_CIN_MAX = 16  # at or below this Cin, skip the MXU and use VPU FMAs


def _adjust_kernel(x_ref, w_ref, bias_ref, o_ref):
    # x_ref:    (1, Cin, T)   NCHW-native slab (channels on sublanes, spatial on lanes)
    # w_ref:    (Cout, Cin)   1x1 conv weight with BN scale already folded in
    # bias_ref: (Cout, 1)     folded BN shift = beta - mean * scale
    # o_ref:    (1, Cout, T)
    x = x_ref[0]                              # (Cin, T)
    w = w_ref[...]                            # (Cout, Cin)
    cin = x.shape[0]
    if cin <= _VPU_CIN_MAX:
        # Tiny K: the MXU would be nearly idle; do Cin broadcast multiply-adds.
        acc = w[:, 0:1] * x[0:1, :]
        for c in range(1, cin):
            acc = acc + w[:, c:c + 1] * x[c:c + 1, :]
    else:
        acc = jnp.dot(w, x, preferred_element_type=jnp.float32)
    o_ref[0] = (acc + bias_ref[...]).astype(o_ref.dtype)


def _pick_hw_tile(hw):
    # Largest lane-aligned (multiple-of-128) tile that evenly divides hw, capped
    # so double-buffered tiles stay far under v7x's smaller scoped VMEM.
    if hw % 128 == 0:
        for t in (2048, 1024, 512, 256, 128):
            if hw % t == 0:
                return t
    return hw  # block == full array extent is always legal


@jax.jit
def adjust_layer(x_nchw, conv_w, bn_gamma, bn_beta, bn_mean, bn_var, eps=1e-5):
    """Forward pass of AdjustLayer (eval-mode BatchNorm).

    x_nchw : (N, Cin, H, W) float32
    conv_w : (Cout, Cin, 1, 1) float32   (PyTorch Conv2d weight layout)
    bn_*   : (Cout,) float32             (BatchNorm2d eval-mode params/stats)
    """
    n, cin, h, w = x_nchw.shape
    cout = conv_w.shape[0]

    # Crop first: exact because the conv is 1x1/stride-1 and BN is pointwise.
    if w < 20:
        x_nchw = x_nchw[:, :, 4:11, 4:11]
        h, w = x_nchw.shape[2], x_nchw.shape[3]

    # Fold BN (eval mode) into the conv weight and a per-channel bias.
    scale = bn_gamma * jax.lax.rsqrt(bn_var + eps)            # (Cout,)
    w_mat = conv_w.reshape(cout, cin) * scale[:, None]        # (Cout, Cin)
    bias = (bn_beta - bn_mean * scale).reshape(cout, 1)       # (Cout, 1)

    hw = h * w
    x_flat = x_nchw.reshape(n, cin, hw)                       # free contiguous reshape

    tile = _pick_hw_tile(hw)
    grid = (n, hw // tile)

    out_flat = pl.pallas_call(
        _adjust_kernel,
        out_shape=jax.ShapeDtypeStruct((n, cout, hw), jnp.float32),
        grid_spec=pl.GridSpec(
            grid=grid,
            in_specs=[
                pl.BlockSpec((1, cin, tile), lambda b, m: (b, 0, m)),
                pl.BlockSpec((cout, cin), lambda b, m: (0, 0)),
                pl.BlockSpec((cout, 1), lambda b, m: (0, 0)),
            ],
            out_specs=pl.BlockSpec((1, cout, tile), lambda b, m: (b, 0, m)),
        ),
        compiler_params=pltpu.CompilerParams(
            dimension_semantics=("parallel", "parallel")),
    )(x_flat, w_mat, bias)

    return out_flat.reshape(n, cout, h, w)


def _torch_like_reference(x_nchw, conv_w, gamma, beta, mean, var, eps=1e-5):
    # Pure-JAX reference matching the PyTorch module (conv -> BN -> crop).
    y = jax.lax.conv_general_dilated(
        x_nchw, conv_w, window_strides=(1, 1), padding="VALID",
        dimension_numbers=("NCHW", "OIHW", "NCHW"))
    scale = (gamma / jnp.sqrt(var + eps)).reshape(1, -1, 1, 1)
    shift = (beta - mean * gamma / jnp.sqrt(var + eps)).reshape(1, -1, 1, 1)
    y = y * scale + shift
    if x_nchw.shape[3] < 20:
        y = y[:, :, 4:11, 4:11]
    return y


if __name__ == "__main__":
    key = jax.random.PRNGKey(0)
    k_x, k_w, k_g, k_b, k_m, k_v = jax.random.split(key, 6)

    N, C_IN, C_OUT, H, W = 2, 4, 8, 16, 16   # spatial 16 < 20 -> crop path taken

    x = jax.random.normal(k_x, (N, C_IN, H, W), dtype=jnp.float32)
    conv_w = jax.random.normal(k_w, (C_OUT, C_IN, 1, 1), dtype=jnp.float32) * 0.1
    bn_gamma = 1.0 + 0.1 * jax.random.normal(k_g, (C_OUT,), dtype=jnp.float32)
    bn_beta = 0.1 * jax.random.normal(k_b, (C_OUT,), dtype=jnp.float32)
    bn_mean = 0.1 * jax.random.normal(k_m, (C_OUT,), dtype=jnp.float32)
    bn_var = jnp.abs(1.0 + 0.1 * jax.random.normal(k_v, (C_OUT,), dtype=jnp.float32))

    out = adjust_layer(x, conv_w, bn_gamma, bn_beta, bn_mean, bn_var)
    out = jax.block_until_ready(out)

    ref = _torch_like_reference(x, conv_w, bn_gamma, bn_beta, bn_mean, bn_var)
    assert out.shape == (N, C_OUT, 7, 7), out.shape
    assert jnp.allclose(out, ref, atol=1e-4, rtol=1e-4)

    print("KERNEL_OK")
</pallas_src>

<mosaic_0001>
module attributes {stable_mosaic.version = 11 : i64} {
  func.func @_adjust_kernel(%arg0: i32, %arg1: i32, %arg2: memref<1x4x49xf32, #tpu.memory_space<vmem>>, %arg3: memref<8x4xf32, #tpu.memory_space<vmem>>, %arg4: memref<8x1xf32, #tpu.memory_space<vmem>>, %arg5: memref<1x8x49xf32, #tpu.memory_space<vmem>>) attributes {dimension_semantics = [#tpu.dimension_semantics<parallel>, #tpu.dimension_semantics<parallel>], iteration_bounds = array<i64: 2, 1>, scalar_prefetch = 0 : i64, scratch_operands = 0 : i64, tpu.core_type = #tpu.core_type<tc>, window_params = [{transform_indices = @transform_0, window_bounds = array<i64: 1, 4, 49>}, {pipeline_mode = #tpu.pipeline_mode<synchronous>, transform_indices = @transform_1, window_bounds = array<i64: 8, 4>}, {pipeline_mode = #tpu.pipeline_mode<synchronous>, transform_indices = @transform_2, window_bounds = array<i64: 8, 1>}, {transform_indices = @transform_3, window_bounds = array<i64: 1, 8, 49>}]} {
    %c0 = arith.constant 0 : index
    %c0_0 = arith.constant 0 : index
    %c0_1 = arith.constant 0 : index
    %0 = vector.load %arg2[%c0, %c0_0, %c0_1] : memref<1x4x49xf32, #tpu.memory_space<vmem>>, vector<1x4x49xf32>
    %1 = vector.shape_cast %0 : vector<1x4x49xf32> to vector<4x49xf32>
    %c0_2 = arith.constant 0 : index
    %c0_3 = arith.constant 0 : index
    %2 = vector.load %arg3[%c0_2, %c0_3] : memref<8x4xf32, #tpu.memory_space<vmem>>, vector<8x4xf32>
    %3 = vector.extract_strided_slice %2 {offsets = [0, 0], sizes = [8, 1], strides = [1, 1]} : vector<8x4xf32> to vector<8x1xf32>
    %4 = vector.extract_strided_slice %1 {offsets = [0, 0], sizes = [1, 49], strides = [1, 1]} : vector<4x49xf32> to vector<1x49xf32>
    %5 = vector.broadcast %3 : vector<8x1xf32> to vector<8x49xf32>
    %6 = vector.broadcast %4 : vector<1x49xf32> to vector<8x49xf32>
    %7 = arith.mulf %5, %6 : vector<8x49xf32>
    %8 = vector.extract_strided_slice %2 {offsets = [0, 1], sizes = [8, 1], strides = [1, 1]} : vector<8x4xf32> to vector<8x1xf32>
    %9 = vector.extract_strided_slice %1 {offsets = [1, 0], sizes = [1, 49], strides = [1, 1]} : vector<4x49xf32> to vector<1x49xf32>
    %10 = vector.broadcast %8 : vector<8x1xf32> to vector<8x49xf32>
    %11 = vector.broadcast %9 : vector<1x49xf32> to vector<8x49xf32>
    %12 = arith.mulf %10, %11 : vector<8x49xf32>
    %13 = arith.addf %7, %12 : vector<8x49xf32>
    %14 = vector.extract_strided_slice %2 {offsets = [0, 2], sizes = [8, 1], strides = [1, 1]} : vector<8x4xf32> to vector<8x1xf32>
    %15 = vector.extract_strided_slice %1 {offsets = [2, 0], sizes = [1, 49], strides = [1, 1]} : vector<4x49xf32> to vector<1x49xf32>
    %16 = vector.broadcast %14 : vector<8x1xf32> to vector<8x49xf32>
    %17 = vector.broadcast %15 : vector<1x49xf32> to vector<8x49xf32>
    %18 = arith.mulf %16, %17 : vector<8x49xf32>
    %19 = arith.addf %13, %18 : vector<8x49xf32>
    %20 = vector.extract_strided_slice %2 {offsets = [0, 3], sizes = [8, 1], strides = [1, 1]} : vector<8x4xf32> to vector<8x1xf32>
    %21 = vector.extract_strided_slice %1 {offsets = [3, 0], sizes = [1, 49], strides = [1, 1]} : vector<4x49xf32> to vector<1x49xf32>
    %22 = vector.broadcast %20 : vector<8x1xf32> to vector<8x49xf32>
    %23 = vector.broadcast %21 : vector<1x49xf32> to vector<8x49xf32>
    %24 = arith.mulf %22, %23 : vector<8x49xf32>
    %25 = arith.addf %19, %24 : vector<8x49xf32>
    %c0_4 = arith.constant 0 : index
    %c0_5 = arith.constant 0 : index
    %26 = vector.load %arg4[%c0_4, %c0_5] : memref<8x1xf32, #tpu.memory_space<vmem>>, vector<8x1xf32>
    %27 = vector.broadcast %26 : vector<8x1xf32> to vector<8x49xf32>
    %28 = arith.addf %25, %27 : vector<8x49xf32>
    %c0_6 = arith.constant 0 : index
    %c0_7 = arith.constant 0 : index
    %c0_8 = arith.constant 0 : index
    %29 = vector.load %arg5[%c0_6, %c0_7, %c0_8] : memref<1x8x49xf32, #tpu.memory_space<vmem>>, vector<1x8x49xf32>
    %30 = vector.shape_cast %29 : vector<1x8x49xf32> to vector<8x49xf32>
    %31 = vector.shape_cast %28 : vector<8x49xf32> to vector<1x8x49xf32>
    tpu.vector_store %arg5[%c0_6, %c0_7, %c0_8], %31 {strides = array<i32>} : memref<1x8x49xf32, #tpu.memory_space<vmem>>, vector<1x8x49xf32>,
    return
  }
  func.func @transform_0(%arg0: i32, %arg1: i32) -> (i32, i32, i32) {
    %c0_i32 = arith.constant 0 : i32
    %c0_i32_0 = arith.constant 0 : i32
    return %arg0, %c0_i32, %arg1 : i32, i32, i32
  }
  func.func @transform_1(%arg0: i32, %arg1: i32) -> (i32, i32) {
    %c0_i32 = arith.constant 0 : i32
    %c0_i32_0 = arith.constant 0 : i32
    %c0_i32_1 = arith.constant 0 : i32
    return %c0_i32, %c0_i32_0 : i32, i32
  }
  func.func @transform_2(%arg0: i32, %arg1: i32) -> (i32, i32) {
    %c0_i32 = arith.constant 0 : i32
    %c0_i32_0 = arith.constant 0 : i32
    %c0_i32_1 = arith.constant 0 : i32
    return %c0_i32, %c0_i32_0 : i32, i32
  }
  func.func @transform_3(%arg0: i32, %arg1: i32) -> (i32, i32, i32) {
    %c0_i32 = arith.constant 0 : i32
    %c0_i32_0 = arith.constant 0 : i32
    return %arg0, %c0_i32, %arg1 : i32, i32, i32
  }
}

</mosaic_0001>

<bundles_post_ra>
// kernel: adjust_layer.1
= control target key start
LH: loop header
LB: loop body
LE: loop exit
PB: predicated region body
PF: predicated region fallthrough
CT: control target
= control target key end

     0   :  { %s413_s12 = smov 0   ;;  %s415_s13 = smov 0   ;;  %s456_s0 = inlined_call_operand.vmem [shape: f32[2,4,49], index: 0, kind: input, shape index: {}]   ;;  %s457_s1 = inlined_call_operand.vmem [shape: f32[8,4], index: 1, kind: input, shape index: {}]   ;;  %s458_s2 = inlined_call_operand.vmem [shape: f32[8,1], index: 2, kind: input, shape index: {}]   ;;  %s459_s3 = inlined_call_operand.vmem [shape: f32[2,8,49], index: 3, kind: output, shape index: {}]  }
   0x1   :  { %s417_s14 = smov 0  }
   0x2 LB: > { %s25_s15 = sadd.s32 1, %s383_s13  ;;  %p326_p0 = scmp.ge.s32.totalorder %s387_s14, 1  ;;  %s387_s14 = sphi %s417_s14, %s13_s14   ;;  %s383_s13 = sphi %s415_s13, %s461_s13   ;;  %s379_s12 = sphi %s413_s12, %s460_s12  }
   0x3   : > { %p27_p1 = scmp.ge.s32.totalorder %s25_s15, 2  ;;  %p155_p2 = scmp.lt.s32.totalorder %s387_s14, 3 }
   0x5   : > { %s463_s15 = smov (%p27_p1, %s25_s15), 0  ;;  %p156_p3 = pnand %p326_p0, %p155_p2 }
   0x6   : > { %v198_v0 = vld [vmem:[%s457_s1] sm:$0xff] (!%p156_p3)  ;;  %v389_v1 = vmov (!%p156_p3), 0   ;;  %v390_v2 = vmov (!%p156_p3), 2   ;;  %v391_v3 = vmov (!%p156_p3), 1   ;;  %v392_v4 = vmov (!%p156_p3), 3   ;;  %p183_p4 = scmp.lt.s32.totalorder (!%p156_p3), %s379_s12, 1 }
   0x7   : > { %159 = sbr.rel (%p156_p3) target bundleno = 152 (0x98), region = 32  ;;  %359 = vset.pattern.permute.xlu0 (!%p156_p3), %v389_v1  ;;  %361 = vset.pattern.permute.xlu1 (!%p156_p3), %v390_v2  ;;  %v239_v5 = vld [vmem:[%s458_s2] sm:$0xff] (!%p156_p3)  ;;  %v204_v6 = vlaneseq (!%p156_p3)  ;;  %vm246_vm0 = vcmask (!%p156_p3), 400384  }
   0x8   : > { %201 = vperm.xlu0 (!%p156_p3), %359, %v198_v0   ;;  %220 = vperm.xlu1 (!%p156_p3), %361, %v198_v0  }
   0x9   : > { %v205_v7 = vshrl.u32 (!%p156_p3), %v204_v6, 7 }
   0xb   : > { %v206_v8 = vsub.s32 (!%p156_p3), 0, %v205_v7  ;;  %v215_v9 = vsub.s32 (!%p156_p3), 1, %v205_v7  ;;  %v225_v12 = vsub.s32 (!%p156_p3), 2, %v205_v7  ;;  %v235_v14 = vsub.s32 (!%p156_p3), 3, %v205_v7 }
   0xc   : > { %360 = vset.pattern.permute.xlu0 (!%p156_p3), %v391_v3  ;;  %362 = vset.pattern.permute.xlu1 (!%p156_p3), %v392_v4 }
   0xd   : > { %210 = vperm.xlu0 (!%p156_p3), %360, %v198_v0   ;;  %230 = vperm.xlu1 (!%p156_p3), %362, %v198_v0  }
   0xe   : > { %s465_s12 = smov (!%p183_p4, %s379_s12), 1 }
   0xf   : > { %s327_s20 = sshll.u32 %s465_s12, 2  ;;  %s328_s24 = sshll.u32 %s465_s12, 3 }
  0x10   : > { %s189_s23 = scalar_lea.vmem %s456_s0, %s327_s20  ;;  %s196_s27 = scalar_lea.vmem %s459_s3, %s328_s24 }
  0x11   : > { %363 = vset.pattern.permute.xlu1 %v389_v1  ;;  %364 = vset.pattern.permute.xlu0 %v389_v1  ;;  %v197_v10 = vld [vmem:[%s189_s23] sm:$0xf] }
  0x12   : > { %242 = vperm.xlu1 %363, %v239_v5   ;;  %v207_v15 = vrot.slane %v197_v10, %v206_v8  ;;  %v216_v16 = vrot.slane %v197_v10, %v215_v9  ;;  %v226_v17 = vrot.slane %v197_v10, %v225_v12  ;;  %v236_v18 = vrot.slane %v197_v10, %v235_v14 }
  0x87   : > { %v202_v11 = vpop.permute.xlu0 %201  ;;  %v221_v13 = vpop.permute.xlu1 %220 }
  0x88   : > { %v208_v21 = vmul.f32 %v207_v15, %v202_v11  ;;  %v227_v23 = vmul.f32 %v226_v17, %v221_v13 }
  0x8c   : > { %v211_v19 = vpop.permute.xlu0 %210  ;;  %v231_v20 = vpop.permute.xlu1 %230 }
  0x8d   : > { %v217_v22 = vmul.f32 %v216_v16, %v211_v19  ;;  %v237_v25 = vmul.f32 %v236_v18, %v231_v20 }
  0x8f   : > { %v218_v24 = vadd.f32 %v217_v22, %v208_v21 }
  0x91   : > { %v228_v26 = vadd.f32 %v227_v23, %v218_v24  ;;  %v243_v27 = vpop.permute.xlu1 %242 }
  0x93   : > { %v238_v28 = vadd.f32 %v237_v25, %v228_v26 }
  0x95   : > { %v245_v29 = vadd.f32 %v243_v27, %v238_v28 }
  0x97   : > { %247 = vst.msk [vmem:[%s196_s27] sm:$0xff] %vm246_vm0, %v245_v29 }
  0x98 PF: > { %s13_s14 = sadd.s32 1, %s387_s14   ;;  %s460_s12 = smov %s383_s13 }
  0x99   : > { %p10_p5 = scmp.ge.s32.totalorder %s13_s14, 4   ;;  %s461_s13 = smov %s463_s15 }
  0x9b   :  { %12 = sbr.rel (!%p10_p5) target bundleno = 2 (0x2), region = 62 }

</bundles_post_ra>
